<compile_context>
chip_gen: v7x
topology: tpu7x:2x2x1
jax: 0.10.0
libtpu: 0.0.40
codegen_flags: <defaults>
</compile_context>

<pallas_src>
import functools

import jax
import jax.numpy as jnp
from jax.experimental import pallas as pl
from jax.experimental.pallas import tpu as pltpu


# -----------------------------------------------------------------------------
# Kernel: one (batch, point-tile, neighbor) grid step.
#   xi_ref, xj_ref : (C, TILE_NP)           channels on sublanes, points on lanes
#   weights        : transposed (out_ch, in_ch); biases as (out_ch, 1) f32 columns
#   out_ref        : (C, TILE_NP) f32, accumulated over the n_near grid axis
#   gaf_ref        : (H, TILE_NP) f32 scratch (reused fai-term when x_i is shared)
# -----------------------------------------------------------------------------
def _attn_in_pnts_kernel(xi_ref, xj_ref,
                         a1f_ref, t1f_ref,         # fai first layer       (H, C), (H, 1)
                         a1pa_ref, t1pa_ref,       # psi|alpha fused layer (2H, C), (2H, 1)
                         a2a_ref, b2a_ref,         # alpha 2nd layer, C/n_near folded (C, H), (C, 1)
                         ga_ref, gb_ref, tg_ref,   # gamma 1st layer w/ fai,psi 2nd layers folded
                         a2g_ref, b2g_ref,         # gamma 2nd layer       (C, H), (C, 1)
                         out_ref, gaf_ref,
                         *, hidden, xi_shared):
    n = pl.program_id(2)
    f32 = jnp.float32
    wdt = a1f_ref.dtype

    @pl.when(n == 0)
    def _init():
        out_ref[...] = jnp.zeros_like(out_ref)

    def lrelu(h):                      # LeakyReLU(0.2) as a single max (no compare+select)
        return jnp.maximum(h, 0.2 * h)

    # gamma's fai-term:  Ga @ lrelu(A1f @ x_i + t1f)
    def gamma_fai_term():
        a_f = lrelu(jnp.dot(a1f_ref[...], xi_ref[...], preferred_element_type=f32)
                    + t1f_ref[...])
        return jnp.dot(ga_ref[...], a_f.astype(wdt), preferred_element_type=f32)

    if xi_shared:
        # x_i has no n_near axis (how SetAbstraction actually calls it): compute
        # once per (batch, point-tile) and reuse from scratch for all n_near steps.
        @pl.when(n == 0)
        def _fai():
            gaf_ref[...] = gamma_fai_term()
        gaf = gaf_ref[...]
    else:
        gaf = gamma_fai_term()

    # psi & alpha hidden layers share one fused (2H, C) @ (C, T) matmul over x_j
    xj = xj_ref[...]
    a_pa = lrelu(jnp.dot(a1pa_ref[...], xj, preferred_element_type=f32) + t1pa_ref[...])
    a_p = a_pa[:hidden, :].astype(wdt)     # H is a multiple of 8 -> sublane-aligned slice
    a_a = a_pa[hidden:, :].astype(wdt)

    # alpha(x_j), with the `channel * ... / n_near` scalars pre-folded into the weights
    alpha = jnp.dot(a2a_ref[...], a_a, preferred_element_type=f32) + b2a_ref[...]

    # gamma( fai(x_i) - psi(x_j) ): fai/psi second layers folded into Ga/Gb/tg
    g_hid = gaf - jnp.dot(gb_ref[...], a_p, preferred_element_type=f32) + tg_ref[...]
    g = (jnp.dot(a2g_ref[...], lrelu(g_hid).astype(wdt), preferred_element_type=f32)
         + b2g_ref[...])

    # softmax over the channel axis (== dim=1 of the NCHW PyTorch tensor), f32
    g = g - jnp.max(g, axis=0, keepdims=True)
    e = jnp.exp(g)
    sm = e * pl.reciprocal(jnp.sum(e, axis=0, keepdims=True), approx=True)

    out_ref[...] += sm * alpha


# -----------------------------------------------------------------------------
# Parameter folding (done once, outside the kernel, in f32)
# -----------------------------------------------------------------------------
def _fuse_params(params, n_near, dtype):
    w1, s1, t1, w2, b2 = params            # (4,C,H) (4,1,H) (4,1,H) (4,H,C) (4,1,C)
    C = w1.shape[1]
    A1 = jnp.transpose(w1 * s1, (0, 2, 1)).astype(jnp.float32)   # (4,H,C), BN scale folded
    T1 = jnp.transpose(t1, (0, 2, 1)).astype(jnp.float32)        # (4,H,1)
    A2 = jnp.transpose(w2, (0, 2, 1)).astype(jnp.float32)        # (4,C,H)
    B2 = jnp.transpose(b2, (0, 2, 1)).astype(jnp.float32)        # (4,C,1)
    F, P, A, G = 0, 1, 2, 3                                      # fai, psi, alpha, gamma

    a1f, t1f = A1[F], T1[F]
    a1pa = jnp.concatenate([A1[P], A1[A]], axis=0)               # (2H, C)
    t1pa = jnp.concatenate([T1[P], T1[A]], axis=0)               # (2H, 1)

    scale = float(C) / float(n_near)                             # channel * ... / n_near
    a2a, b2a = scale * A2[A], scale * B2[A]

    ga = A1[G] @ A2[F]                                           # (H, H)
    gb = A1[G] @ A2[P]                                           # (H, H)
    tg = A1[G] @ (B2[F] - B2[P]) + T1[G]                         # (H, 1)
    a2g, b2g = A2[G], B2[G]

    w = lambda x: x.astype(dtype)       # matmul weights in compute dtype, biases stay f32
    return (w(a1f), t1f, w(a1pa), t1pa, w(a2a), b2a, w(ga), w(gb), tg, w(a2g), b2g)


def _pick_tile(n_point):
    for cand in (512, 256, 128):
        if n_point % cand == 0:
            return cand
    return n_point                       # block == full dim is always legal


# -----------------------------------------------------------------------------
# Wrapper: AttentionInPnts.forward
# -----------------------------------------------------------------------------
def attention_in_pnts(x_i, x_j, params, *, compute_dtype=jnp.float32, tile_np=None):
    """x_i: (B, C, NN_i, NP) with NN_i in {1, NN};  x_j: (B, C, NN, NP)  (NCHW).
    Returns (B, NP, C) float32, matching the module's final .permute(0, 2, 1)."""
    B, C, NN, NP = x_j.shape
    NNi = x_i.shape[2]
    assert x_i.shape == (B, C, NNi, NP) and NNi in (1, NN)

    if tile_np is None:
        tile_np = _pick_tile(NP)
    assert NP % tile_np == 0
    np_tiles = NP // tile_np

    fused = _fuse_params(params, NN, compute_dtype)
    hidden = fused[0].shape[0]           # C + 8

    # Free, contiguous reshape; no HBM transpose pass for the big activations.
    xi = x_i.reshape(B, C, NNi * NP).astype(compute_dtype)
    xj = x_j.reshape(B, C, NN * NP).astype(compute_dtype)

    xi_shared = (NNi == 1)
    if xi_shared:
        xi_map = lambda b, p, n: (b, 0, p)
    else:
        xi_map = lambda b, p, n: (b, 0, n * np_tiles + p)
    xj_map = lambda b, p, n: (b, 0, n * np_tiles + p)

    def wspec(arr):                      # small weights: whole-array block, fetched once
        return pl.BlockSpec(arr.shape, lambda b, p, n: (0,) * arr.ndim)

    # TODO(synk): on v5e, if the trace shows exposed DMA, bump the two activation
    # BlockSpecs to pipeline_mode=pl.Buffered(3).
    out = pl.pallas_call(
        functools.partial(_attn_in_pnts_kernel, hidden=hidden, xi_shared=xi_shared),
        out_shape=jax.ShapeDtypeStruct((B, C, NP), jnp.float32),
        grid=(B, np_tiles, NN),
        in_specs=[pl.BlockSpec((None, C, tile_np), xi_map),
                  pl.BlockSpec((None, C, tile_np), xj_map)]
                 + [wspec(w) for w in fused],
        out_specs=pl.BlockSpec((None, C, tile_np), lambda b, p, n: (b, 0, p)),
        scratch_shapes=[pltpu.VMEM((hidden, tile_np), jnp.float32)],
        compiler_params=pltpu.CompilerParams(
            dimension_semantics=("parallel", "parallel", "arbitrary"),
            vmem_limit_bytes=48 * 1024 * 1024,   # fits v5e/v6e/v7x; tile sized well below it
        ),
    )(xi, xj, *fused)

    # Lane-dense (B, C, NP) store inside the kernel; cheap permute outside.
    return jnp.transpose(out, (0, 2, 1))


# -----------------------------------------------------------------------------
# Deterministic parameter construction (synthetic weights, PyTorch-default BN)
# -----------------------------------------------------------------------------
def make_params(key, C):
    H = C + 8
    eps = 1e-5
    keys = jax.random.split(key, 16)
    w1_list, s1_list, t1_list, w2_list, b2_list = [], [], [], [], []
    bn_scale = 1.0 / jnp.sqrt(1.0 + eps)    # BN eval defaults: mean=0, var=1, gamma=1, beta=0
    for m in range(4):                      # fai, psi, alpha, gamma
        k1, k2, k3, k4 = keys[4 * m: 4 * m + 4]
        W1 = 0.1 * jax.random.normal(k1, (C, H), jnp.float32)
        b1 = 0.1 * jax.random.normal(k2, (H,), jnp.float32)
        W2 = 0.1 * jax.random.normal(k3, (H, C), jnp.float32)
        b2 = 0.1 * jax.random.normal(k4, (C,), jnp.float32)
        s1 = jnp.full((H,), bn_scale, jnp.float32)
        t1 = b1 * bn_scale
        w1_list.append(W1); s1_list.append(s1[None, :]); t1_list.append(t1[None, :])
        w2_list.append(W2); b2_list.append(b2[None, :])
    return (jnp.stack(w1_list),          # (4, C, H)
            jnp.stack(s1_list),          # (4, 1, H)
            jnp.stack(t1_list),          # (4, 1, H)
            jnp.stack(w2_list),          # (4, H, C)
            jnp.stack(b2_list))          # (4, 1, C)


# Pure-JAX reference (same math as the PyTorch module, NCHW, un-fused params).
def reference(x_i, x_j, params):
    w1, s1, t1, w2, b2 = params
    B, C, NN, NP = x_j.shape

    def mlp(x, k):
        h = jnp.einsum('bcnp,ch->bhnp', x, w1[k])
        h = h * s1[k, 0][None, :, None, None] + t1[k, 0][None, :, None, None]
        h = jnp.where(h >= 0, h, 0.2 * h)
        return jnp.einsum('bhnp,hc->bcnp', h, w2[k]) + b2[k, 0][None, :, None, None]

    fai_xi = mlp(x_i, 0)
    psi_xj = mlp(x_j, 1)
    alpha_xj = mlp(x_j, 2)
    g = mlp(fai_xi - psi_xj, 3)
    sm = jax.nn.softmax(g, axis=1)
    y = C * sm * alpha_xj
    y = jnp.sum(y, axis=2) / NN              # (B, C, NP)
    return jnp.transpose(y, (0, 2, 1))       # (B, NP, C)


if __name__ == "__main__":
    B, C, NN, NP = 2, 16, 8, 256             # bs, channel, n_near, n_point
    key = jax.random.PRNGKey(0)
    kx, kp = jax.random.split(key)
    kxi, kxj, kxi1 = jax.random.split(kx, 3)

    x_j = jax.random.normal(kxj, (B, C, NN, NP), jnp.float32)
    params = make_params(kp, C)

    # Case 1: generic x_i with a full n_near axis, f32 compute, 2 point-tiles.
    x_i = jax.random.normal(kxi, (B, C, NN, NP), jnp.float32)
    out = jax.block_until_ready(
        attention_in_pnts(x_i, x_j, params, compute_dtype=jnp.float32, tile_np=128))
    ref = reference(x_i, x_j, params)
    assert out.shape == (B, NP, C)
    assert jnp.allclose(out, ref, atol=5e-3, rtol=5e-3), "f32 mismatch vs reference"

    # Case 2: x_i broadcast over n_near (how SetAbstraction calls it), bf16 compute.
    x_i1 = jax.random.normal(kxi1, (B, C, 1, NP), jnp.float32)
    out_bf = jax.block_until_ready(
        attention_in_pnts(x_i1, x_j, params, compute_dtype=jnp.bfloat16))
    ref_bf = reference(x_i1, x_j, params)
    assert out_bf.shape == (B, NP, C)
    assert jnp.allclose(out_bf, ref_bf, atol=5e-2, rtol=5e-2), "bf16 mismatch vs reference"

    print("KERNEL_OK")
</pallas_src>

<mosaic_0001>
module attributes {stable_mosaic.version = 11 : i64} {
  func.func @_attn_in_pnts_kernel(%arg0: i32, %arg1: i32, %arg2: i32, %arg3: memref<1x16x128xf32, #tpu.memory_space<vmem>>, %arg4: memref<1x16x128xf32, #tpu.memory_space<vmem>>, %arg5: memref<24x16xf32, #tpu.memory_space<vmem>>, %arg6: memref<24x1xf32, #tpu.memory_space<vmem>>, %arg7: memref<48x16xf32, #tpu.memory_space<vmem>>, %arg8: memref<48x1xf32, #tpu.memory_space<vmem>>, %arg9: memref<16x24xf32, #tpu.memory_space<vmem>>, %arg10: memref<16x1xf32, #tpu.memory_space<vmem>>, %arg11: memref<24x24xf32, #tpu.memory_space<vmem>>, %arg12: memref<24x24xf32, #tpu.memory_space<vmem>>, %arg13: memref<24x1xf32, #tpu.memory_space<vmem>>, %arg14: memref<16x24xf32, #tpu.memory_space<vmem>>, %arg15: memref<16x1xf32, #tpu.memory_space<vmem>>, %arg16: memref<1x16x128xf32, #tpu.memory_space<vmem>>, %arg17: memref<24x128xf32, #tpu.memory_space<vmem>>) attributes {dimension_semantics = [#tpu.dimension_semantics<parallel>, #tpu.dimension_semantics<parallel>, #tpu.dimension_semantics<arbitrary>], iteration_bounds = array<i64: 2, 2, 8>, scalar_prefetch = 0 : i64, scratch_operands = 1 : i64, tpu.core_type = #tpu.core_type<tc>, window_params = [{transform_indices = @transform_0, window_bounds = array<i64: 1, 16, 128>}, {transform_indices = @transform_1, window_bounds = array<i64: 1, 16, 128>}, {pipeline_mode = #tpu.pipeline_mode<synchronous>, transform_indices = @transform_2, window_bounds = array<i64: 24, 16>}, {pipeline_mode = #tpu.pipeline_mode<synchronous>, transform_indices = @transform_3, window_bounds = array<i64: 24, 1>}, {pipeline_mode = #tpu.pipeline_mode<synchronous>, transform_indices = @transform_4, window_bounds = array<i64: 48, 16>}, {pipeline_mode = #tpu.pipeline_mode<synchronous>, transform_indices = @transform_5, window_bounds = array<i64: 48, 1>}, {pipeline_mode = #tpu.pipeline_mode<synchronous>, transform_indices = @transform_6, window_bounds = array<i64: 16, 24>}, {pipeline_mode = #tpu.pipeline_mode<synchronous>, transform_indices = @transform_7, window_bounds = array<i64: 16, 1>}, {pipeline_mode = #tpu.pipeline_mode<synchronous>, transform_indices = @transform_8, window_bounds = array<i64: 24, 24>}, {pipeline_mode = #tpu.pipeline_mode<synchronous>, transform_indices = @transform_9, window_bounds = array<i64: 24, 24>}, {pipeline_mode = #tpu.pipeline_mode<synchronous>, transform_indices = @transform_10, window_bounds = array<i64: 24, 1>}, {pipeline_mode = #tpu.pipeline_mode<synchronous>, transform_indices = @transform_11, window_bounds = array<i64: 16, 24>}, {pipeline_mode = #tpu.pipeline_mode<synchronous>, transform_indices = @transform_12, window_bounds = array<i64: 16, 1>}, {transform_indices = @transform_13, window_bounds = array<i64: 1, 16, 128>}]} {
    %c0_i32 = arith.constant 0 : i32
    %0 = arith.cmpi eq, %arg2, %c0_i32 : i32
    %1 = arith.extui %0 : i1 to i32
    %c0_i32_0 = arith.constant 0 : i32
    %2 = arith.cmpi ne, %1, %c0_i32_0 : i32
    scf.if %2 {
      %cst_44 = arith.constant 0.000000e+00 : f32
      %63 = vector.broadcast %cst_44 : f32 to vector<16x128xf32>
      %c0_45 = arith.constant 0 : index
      %c0_46 = arith.constant 0 : index
      %c0_47 = arith.constant 0 : index
      %64 = vector.load %arg16[%c0_45, %c0_46, %c0_47] : memref<1x16x128xf32, #tpu.memory_space<vmem>>, vector<1x16x128xf32>
      %65 = vector.shape_cast %64 : vector<1x16x128xf32> to vector<16x128xf32>
      %66 = vector.shape_cast %63 : vector<16x128xf32> to vector<1x16x128xf32>
      tpu.vector_store %arg16[%c0_45, %c0_46, %c0_47], %66 {strides = array<i32>} : memref<1x16x128xf32, #tpu.memory_space<vmem>>, vector<1x16x128xf32>,
    } else {
    }
    %c0 = arith.constant 0 : index
    %c0_1 = arith.constant 0 : index
    %3 = vector.load %arg5[%c0, %c0_1] : memref<24x16xf32, #tpu.memory_space<vmem>>, vector<24x16xf32>
    %c0_2 = arith.constant 0 : index
    %c0_3 = arith.constant 0 : index
    %c0_4 = arith.constant 0 : index
    %4 = vector.load %arg3[%c0_2, %c0_3, %c0_4] : memref<1x16x128xf32, #tpu.memory_space<vmem>>, vector<1x16x128xf32>
    %5 = vector.shape_cast %4 : vector<1x16x128xf32> to vector<16x128xf32>
    %cst = arith.constant dense<0.000000e+00> : vector<24x128xf32>
    %6 = tpu.matmul %3, %5, %cst {dimension_numbers = #tpu.dot_dimension_numbers<[1], [0], [0], [1], [0, 0, 1, 1], [], []>} : vector<24x16xf32>, vector<16x128xf32>, vector<24x128xf32> -> vector<24x128xf32>
    %c0_5 = arith.constant 0 : index
    %c0_6 = arith.constant 0 : index
    %7 = vector.load %arg6[%c0_5, %c0_6] : memref<24x1xf32, #tpu.memory_space<vmem>>, vector<24x1xf32>
    %8 = vector.broadcast %7 : vector<24x1xf32> to vector<24x128xf32>
    %9 = arith.addf %6, %8 : vector<24x128xf32>
    %cst_7 = arith.constant 2.000000e-01 : f32
    %10 = vector.broadcast %cst_7 : f32 to vector<24x128xf32>
    %11 = arith.mulf %10, %9 : vector<24x128xf32>
    %12 = arith.maximumf %9, %11 : vector<24x128xf32>
    %c0_8 = arith.constant 0 : index
    %c0_9 = arith.constant 0 : index
    %13 = vector.load %arg11[%c0_8, %c0_9] : memref<24x24xf32, #tpu.memory_space<vmem>>, vector<24x24xf32>
    %cst_10 = arith.constant dense<0.000000e+00> : vector<24x128xf32>
    %14 = tpu.matmul %13, %12, %cst_10 {dimension_numbers = #tpu.dot_dimension_numbers<[1], [0], [0], [1], [0, 0, 1, 1], [], []>} : vector<24x24xf32>, vector<24x128xf32>, vector<24x128xf32> -> vector<24x128xf32>
    %c0_11 = arith.constant 0 : index
    %c0_12 = arith.constant 0 : index
    %c0_13 = arith.constant 0 : index
    %15 = vector.load %arg4[%c0_11, %c0_12, %c0_13] : memref<1x16x128xf32, #tpu.memory_space<vmem>>, vector<1x16x128xf32>
    %16 = vector.shape_cast %15 : vector<1x16x128xf32> to vector<16x128xf32>
    %c0_14 = arith.constant 0 : index
    %c0_15 = arith.constant 0 : index
    %17 = vector.load %arg7[%c0_14, %c0_15] : memref<48x16xf32, #tpu.memory_space<vmem>>, vector<48x16xf32>
    %cst_16 = arith.constant dense<0.000000e+00> : vector<48x128xf32>
    %18 = tpu.matmul %17, %16, %cst_16 {dimension_numbers = #tpu.dot_dimension_numbers<[1], [0], [0], [1], [0, 0, 1, 1], [], []>} : vector<48x16xf32>, vector<16x128xf32>, vector<48x128xf32> -> vector<48x128xf32>
    %c0_17 = arith.constant 0 : index
    %c0_18 = arith.constant 0 : index
    %19 = vector.load %arg8[%c0_17, %c0_18] : memref<48x1xf32, #tpu.memory_space<vmem>>, vector<48x1xf32>
    %20 = vector.broadcast %19 : vector<48x1xf32> to vector<48x128xf32>
    %21 = arith.addf %18, %20 : vector<48x128xf32>
    %cst_19 = arith.constant 2.000000e-01 : f32
    %22 = vector.broadcast %cst_19 : f32 to vector<48x128xf32>
    %23 = arith.mulf %22, %21 : vector<48x128xf32>
    %24 = arith.maximumf %21, %23 : vector<48x128xf32>
    %25 = vector.extract_strided_slice %24 {offsets = [0, 0], sizes = [24, 128], strides = [1, 1]} : vector<48x128xf32> to vector<24x128xf32>
    %26 = vector.extract_strided_slice %24 {offsets = [24, 0], sizes = [24, 128], strides = [1, 1]} : vector<48x128xf32> to vector<24x128xf32>
    %c0_20 = arith.constant 0 : index
    %c0_21 = arith.constant 0 : index
    %27 = vector.load %arg9[%c0_20, %c0_21] : memref<16x24xf32, #tpu.memory_space<vmem>>, vector<16x24xf32>
    %cst_22 = arith.constant dense<0.000000e+00> : vector<16x128xf32>
    %28 = tpu.matmul %27, %26, %cst_22 {dimension_numbers = #tpu.dot_dimension_numbers<[1], [0], [0], [1], [0, 0, 1, 1], [], []>} : vector<16x24xf32>, vector<24x128xf32>, vector<16x128xf32> -> vector<16x128xf32>
    %c0_23 = arith.constant 0 : index
    %c0_24 = arith.constant 0 : index
    %29 = vector.load %arg10[%c0_23, %c0_24] : memref<16x1xf32, #tpu.memory_space<vmem>>, vector<16x1xf32>
    %30 = vector.broadcast %29 : vector<16x1xf32> to vector<16x128xf32>
    %31 = arith.addf %28, %30 : vector<16x128xf32>
    %c0_25 = arith.constant 0 : index
    %c0_26 = arith.constant 0 : index
    %32 = vector.load %arg12[%c0_25, %c0_26] : memref<24x24xf32, #tpu.memory_space<vmem>>, vector<24x24xf32>
    %cst_27 = arith.constant dense<0.000000e+00> : vector<24x128xf32>
    %33 = tpu.matmul %32, %25, %cst_27 {dimension_numbers = #tpu.dot_dimension_numbers<[1], [0], [0], [1], [0, 0, 1, 1], [], []>} : vector<24x24xf32>, vector<24x128xf32>, vector<24x128xf32> -> vector<24x128xf32>
    %34 = arith.subf %14, %33 : vector<24x128xf32>
    %c0_28 = arith.constant 0 : index
    %c0_29 = arith.constant 0 : index
    %35 = vector.load %arg13[%c0_28, %c0_29] : memref<24x1xf32, #tpu.memory_space<vmem>>, vector<24x1xf32>
    %36 = vector.broadcast %35 : vector<24x1xf32> to vector<24x128xf32>
    %37 = arith.addf %34, %36 : vector<24x128xf32>
    %c0_30 = arith.constant 0 : index
    %c0_31 = arith.constant 0 : index
    %38 = vector.load %arg14[%c0_30, %c0_31] : memref<16x24xf32, #tpu.memory_space<vmem>>, vector<16x24xf32>
    %cst_32 = arith.constant 2.000000e-01 : f32
    %39 = vector.broadcast %cst_32 : f32 to vector<24x128xf32>
    %40 = arith.mulf %39, %37 : vector<24x128xf32>
    %41 = arith.maximumf %37, %40 : vector<24x128xf32>
    %cst_33 = arith.constant dense<0.000000e+00> : vector<16x128xf32>
    %42 = tpu.matmul %38, %41, %cst_33 {dimension_numbers = #tpu.dot_dimension_numbers<[1], [0], [0], [1], [0, 0, 1, 1], [], []>} : vector<16x24xf32>, vector<24x128xf32>, vector<16x128xf32> -> vector<16x128xf32>
    %c0_34 = arith.constant 0 : index
    %c0_35 = arith.constant 0 : index
    %43 = vector.load %arg15[%c0_34, %c0_35] : memref<16x1xf32, #tpu.memory_space<vmem>>, vector<16x1xf32>
    %44 = vector.broadcast %43 : vector<16x1xf32> to vector<16x128xf32>
    %45 = arith.addf %42, %44 : vector<16x128xf32>
    %cst_36 = arith.constant dense<0xFF800000> : vector<128xf32>
    %46 = vector.multi_reduction <maximumf>, %45, %cst_36 [0] : vector<16x128xf32> to vector<128xf32>
    %47 = vector.shape_cast %46 : vector<128xf32> to vector<1x128xf32>
    %48 = vector.broadcast %47 : vector<1x128xf32> to vector<16x128xf32>
    %49 = arith.subf %45, %48 : vector<16x128xf32>
    %50 = math.exp %49 : vector<16x128xf32>
    %cst_37 = arith.constant dense<0.000000e+00> : vector<128xf32>
    %51 = vector.multi_reduction <add>, %50, %cst_37 [0] : vector<16x128xf32> to vector<128xf32>
    %52 = vector.shape_cast %51 : vector<128xf32> to vector<1x128xf32>
    %53 = tpu.reciprocal %52 {approx = true} : vector<1x128xf32> -> vector<1x128xf32>
    %54 = vector.broadcast %53 : vector<1x128xf32> to vector<16x128xf32>
    %55 = arith.mulf %50, %54 : vector<16x128xf32>
    %c0_38 = arith.constant 0 : index
    %c0_39 = arith.constant 0 : index
    %c0_40 = arith.constant 0 : index
    %56 = vector.load %arg16[%c0_38, %c0_39, %c0_40] : memref<1x16x128xf32, #tpu.memory_space<vmem>>, vector<1x16x128xf32>
    %57 = vector.shape_cast %56 : vector<1x16x128xf32> to vector<16x128xf32>
    %58 = arith.mulf %55, %31 : vector<16x128xf32>
    %59 = arith.addf %57, %58 : vector<16x128xf32>
    %c0_41 = arith.constant 0 : index
    %c0_42 = arith.constant 0 : index
    %c0_43 = arith.constant 0 : index
    %60 = vector.load %arg16[%c0_41, %c0_42, %c0_43] : memref<1x16x128xf32, #tpu.memory_space<vmem>>, vector<1x16x128xf32>
    %61 = vector.shape_cast %60 : vector<1x16x128xf32> to vector<16x128xf32>
    %62 = vector.shape_cast %59 : vector<16x128xf32> to vector<1x16x128xf32>
    tpu.vector_store %arg16[%c0_41, %c0_42, %c0_43], %62 {strides = array<i32>} : memref<1x16x128xf32, #tpu.memory_space<vmem>>, vector<1x16x128xf32>,
    return
  }
  func.func @transform_0(%arg0: i32, %arg1: i32, %arg2: i32) -> (i32, i32, i32) {
    %c2_i32 = arith.constant 2 : i32
    %0 = arith.muli %arg2, %c2_i32 : i32
    %1 = arith.addi %0, %arg1 : i32
    %c0_i32 = arith.constant 0 : i32
    %c0_i32_0 = arith.constant 0 : i32
    return %arg0, %c0_i32, %1 : i32, i32, i32
  }
  func.func @transform_1(%arg0: i32, %arg1: i32, %arg2: i32) -> (i32, i32, i32) {
    %c2_i32 = arith.constant 2 : i32
    %0 = arith.muli %arg2, %c2_i32 : i32
    %1 = arith.addi %0, %arg1 : i32
    %c0_i32 = arith.constant 0 : i32
    %c0_i32_0 = arith.constant 0 : i32
    return %arg0, %c0_i32, %1 : i32, i32, i32
  }
  func.func @transform_2(%arg0: i32, %arg1: i32, %arg2: i32) -> (i32, i32) {
    %c0_i32 = arith.constant 0 : i32
    %c0_i32_0 = arith.constant 0 : i32
    %c0_i32_1 = arith.constant 0 : i32
    return %c0_i32, %c0_i32_0 : i32, i32
  }
  func.func @transform_3(%arg0: i32, %arg1: i32, %arg2: i32) -> (i32, i32) {
    %c0_i32 = arith.constant 0 : i32
    %c0_i32_0 = arith.constant 0 : i32
    %c0_i32_1 = arith.constant 0 : i32
    return %c0_i32, %c0_i32_0 : i32, i32
  }
  func.func @transform_4(%arg0: i32, %arg1: i32, %arg2: i32) -> (i32, i32) {
    %c0_i32 = arith.constant 0 : i32
    %c0_i32_0 = arith.constant 0 : i32
    %c0_i32_1 = arith.constant 0 : i32
    return %c0_i32, %c0_i32_0 : i32, i32
  }
  func.func @transform_5(%arg0: i32, %arg1: i32, %arg2: i32) -> (i32, i32) {
    %c0_i32 = arith.constant 0 : i32
    %c0_i32_0 = arith.constant 0 : i32
    %c0_i32_1 = arith.constant 0 : i32
    return %c0_i32, %c0_i32_0 : i32, i32
  }
  func.func @transform_6(%arg0: i32, %arg1: i32, %arg2: i32) -> (i32, i32) {
    %c0_i32 = arith.constant 0 : i32
    %c0_i32_0 = arith.constant 0 : i32
    %c0_i32_1 = arith.constant 0 : i32
    return %c0_i32, %c0_i32_0 : i32, i32
  }
  func.func @transform_7(%arg0: i32, %arg1: i32, %arg2: i32) -> (i32, i32) {
    %c0_i32 = arith.constant 0 : i32
    %c0_i32_0 = arith.constant 0 : i32
    %c0_i32_1 = arith.constant 0 : i32
    return %c0_i32, %c0_i32_0 : i32, i32
  }
  func.func @transform_8(%arg0: i32, %arg1: i32, %arg2: i32) -> (i32, i32) {
    %c0_i32 = arith.constant 0 : i32
    %c0_i32_0 = arith.constant 0 : i32
    %c0_i32_1 = arith.constant 0 : i32
    return %c0_i32, %c0_i32_0 : i32, i32
  }
  func.func @transform_9(%arg0: i32, %arg1: i32, %arg2: i32) -> (i32, i32) {
    %c0_i32 = arith.constant 0 : i32
    %c0_i32_0 = arith.constant 0 : i32
    %c0_i32_1 = arith.constant 0 : i32
    return %c0_i32, %c0_i32_0 : i32, i32
  }
  func.func @transform_10(%arg0: i32, %arg1: i32, %arg2: i32) -> (i32, i32) {
    %c0_i32 = arith.constant 0 : i32
    %c0_i32_0 = arith.constant 0 : i32
    %c0_i32_1 = arith.constant 0 : i32
    return %c0_i32, %c0_i32_0 : i32, i32
  }
  func.func @transform_11(%arg0: i32, %arg1: i32, %arg2: i32) -> (i32, i32) {
    %c0_i32 = arith.constant 0 : i32
    %c0_i32_0 = arith.constant 0 : i32
    %c0_i32_1 = arith.constant 0 : i32
    return %c0_i32, %c0_i32_0 : i32, i32
  }
  func.func @transform_12(%arg0: i32, %arg1: i32, %arg2: i32) -> (i32, i32) {
    %c0_i32 = arith.constant 0 : i32
    %c0_i32_0 = arith.constant 0 : i32
    %c0_i32_1 = arith.constant 0 : i32
    return %c0_i32, %c0_i32_0 : i32, i32
  }
  func.func @transform_13(%arg0: i32, %arg1: i32, %arg2: i32) -> (i32, i32, i32) {
    %c0_i32 = arith.constant 0 : i32
    %c0_i32_0 = arith.constant 0 : i32
    return %arg0, %c0_i32, %arg1 : i32, i32, i32
  }
}

</mosaic_0001>

<bundles_post_ra>
// kernel: tpu_custom_call.1
= control target key start
LH: loop header
LB: loop body
LE: loop exit
PB: predicated region body
PF: predicated region fallthrough
CT: control target
= control target key end

     0   :  { %s2508_s0 = inlined_call_operand.hbm [shape: f32[2,16,2048], index: 0, kind: input, shape index: {}]   ;;  %s2509_s1 = inlined_call_operand.hbm [shape: f32[2,16,2048], index: 1, kind: input, shape index: {}]   ;;  %s2510_s2 = inlined_call_operand.vmem [shape: f32[24,16], index: 2, kind: input, shape index: {}]   ;;  %s2511_s3 = inlined_call_operand.vmem [shape: f32[24,1], index: 3, kind: input, shape index: {}]   ;;  %s2512_s4 = inlined_call_operand.vmem [shape: f32[48,16], index: 4, kind: input, shape index: {}]   ;;  %s2513_s5 = inlined_call_operand.vmem [shape: f32[48,1], index: 5, kind: input, shape index: {}]   ;;  %s2514_s6 = inlined_call_operand.vmem [shape: f32[16,24], index: 6, kind: input, shape index: {}]   ;;  %s2515_s7 = inlined_call_operand.vmem [shape: f32[16,1], index: 7, kind: input, shape index: {}]   ;;  %s2516_s8 = inlined_call_operand.vmem [shape: f32[24,24], index: 8, kind: input, shape index: {}]   ;;  %s2517_s9 = inlined_call_operand.vmem [shape: f32[24,24], index: 9, kind: input, shape index: {}]   ;;  %s2518_s10 = inlined_call_operand.vmem [shape: f32[24,1], index: 10, kind: input, shape index: {}]   ;;  %s2519_s11 = inlined_call_operand.vmem [shape: f32[16,24], index: 11, kind: input, shape index: {}]   ;;  %s2520_s12 = inlined_call_operand.vmem [shape: f32[16,1], index: 12, kind: input, shape index: {}]   ;;  %s2521_s13 = inlined_call_operand.hbm [shape: f32[2,16,256], index: 13, kind: output, shape index: {}]  }
   0x1   :  { %2541 = sst [smem:[#allocation25_spill]] %s2508_s0 }
   0x2   :  { %2542 = sst [smem:[#allocation26_spill]] %s2514_s6 }
   0x3   :  { %2543 = sst [smem:[#allocation27_spill]] %s2515_s7 }
   0x4   :  { %2544 = sst [smem:[#allocation28_spill]] %s2516_s8 }
   0x5   :  { %2545 = sst [smem:[#allocation29_spill]] %s2517_s9 }
   0x6   :  { %2546 = sst [smem:[#allocation30_spill]] %s2519_s11 }
   0x7   :  { %2547 = sst [smem:[#allocation31_spill]] %s2521_s13 }
   0x8   :  { %18 = vsyncpa [#allocation4], 0 }
   0x9   :  { %20 = vsyncpa [#allocation4 + $0x1], 0 }
   0xa   :  { %21 = vsyncpa [#allocation7], 0 }
   0xb   :  { %23 = vsyncpa [#allocation7 + $0x1], 0 }
   0xc   :  { %24 = vsyncpa [#allocation5], 0 }
   0xd   :  { %26 = vsyncpa [#allocation5 + $0x1], 0  ;;  %s2015_s25 = smov 0   ;;  %s2017_s26 = smov 0  }
   0xe   :  { %s2019_s27 = smov 0   ;;  %s2021_s28 = smov 0  }
   0xf   :  { %s2023_s29 = smov 0   ;;  %s2025_s30 = smov 0  }
  0x10   :  { %s2027_s14 = smov 0   ;;  %s2029_s15 = smov 0  }
  0x11   :  { %s2031_s16 = smov 0   ;;  %s2033_s17 = smov 0  }
  0x12   :  { %s2035_s18 = smov 0   ;;  %s2037_s19 = smov 0  }
  0x13   :  { %s2039_s20 = smov 0  }
  0x14 LB: > { %2548 = sst [smem:[#allocation12_spill]] %s1889_s27  ;;  %s44_s23 = sadd.s32 1, %s1917_s17  ;;  %s1929_s20 = sphi %s2039_s20, %s32_s20   ;;  %s1925_s19 = sphi %s2037_s19, %s2598_s19   ;;  %s1921_s18 = sphi %s2035_s18, %s2603_s18   ;;  %s1917_s17 = sphi %s2033_s17, %s2596_s17   ;;  %s1913_s16 = sphi %s2031_s16, %s2595_s16   ;;  %s1909_s15 = sphi %s2029_s15, %s2594_s15   ;;  %s1905_s14 = sphi %s2027_s14, %s2593_s14   ;;  %s1901_s30 = sphi %s2025_s30, %s2592_s30   ;;  %s1897_s29 = sphi %s2023_s29, %s2602_s29   ;;  %s1893_s28 = sphi %s2021_s28, %s2601_s28   ;;  %s1889_s27 = sphi %s2019_s27, %s2590_s27   ;;  %s1885_s26 = sphi %s2017_s26, %s2600_s26   ;;  %s1881_s25 = sphi %s2015_s25, %s2599_s25  }
  0x15   : > { %2549 = sst [smem:[#allocation13_spill]] %s1901_s30  ;;  %s47_s24 = sadd.s32 1, %s1921_s18 }
  0x16   : > { %2550 = sst [smem:[#allocation14_spill]] %s1909_s15  ;;  %p45_p0 = scmp.ge.s32.totalorder %s44_s23, 8 }
  0x17   : > { %2551 = sst [smem:[#allocation15_spill]] %s1913_s16  ;;  %s51_s13 = sadd.s32 1, %s1925_s19 }
  0x18   : > { %2552 = sst [smem:[#allocation16_spill]] %s1917_s17  ;;  %s1412_s15 = sshll.u32 %s1917_s17, 1 }
  0x19   : > { %2553 = sst [smem:[#allocation17_spill]] %s1921_s18  ;;  %s64_s16 = sadd.s32 1, %s1901_s30 }
  0x1a   : > { %2554 = sst [smem:[#allocation18_spill]] %s1925_s19  ;;  %s2605_s23 = smov (%p45_p0, %s44_s23), 0 }
  0x1b   : > { %2555 = sst [smem:[#allocation19_spill]] %s2605_s23  ;;  %s2607_s24 = smov (!%p45_p0, %s47_s24), %s1921_s18 }
  0x1c   : > { %s2091_s11 = sadd.s32 %s1921_s18, %s1412_s15  ;;  %s1413_s9 = sshll.u32 %s2605_s23, 1 }
  0x1d   : > { %p49_p1 = scmp.ge.s32.totalorder %s2607_s24, 2  ;;  %p71_p2 = scmp.ne.s32.totalorder %s1901_s30, %s1897_s29 }
  0x1e   : > { %p72_p3 = scmp.eq.s32.totalorder %s1929_s20, 0  ;;  %p77_p4 = scmp.ne.s32.totalorder %s1897_s29, %s1893_s28 }
  0x1f   : > { %s2609_s24 = smov (%p49_p1, %s2607_s24), 0  ;;  %s2611_s13 = smov (!%p49_p1, %s51_s13), %s1925_s19 }
  0x20   : > { %2556 = sst [smem:[#allocation20_spill]] %s2609_s24  ;;  %s58_s22 = sadd.s32 %s1413_s9, %s2609_s24 }
  0x21   : > { %p2103_p5 = por %p72_p3, %p71_p2  ;;  %p53_p6 = scmp.ge.s32.totalorder %s2611_s13, 2 }
  0x22   : > { %s60_s21 = ssub.s32 %s2091_s11, %s58_s22  ;;  %s2558_s23 = sadd.s32 4294967295, %s1929_s20  }
  0x23   : > { %p78_p7 = scmp.eq.s32.totalorder %s2558_s23, 0  ;;  %s351_s28 = ssub.s32 %s1921_s18, %s2609_s24 }
  0x24   : > { %s2613_s13 = smov (%p53_p6, %s2611_s13), 0  ;;  %s355_s17 = sadd.s32 1, %s1889_s27 }
  0x25   : > { %2559 = sst [smem:[#allocation21_spill]] %s2613_s13  ;;  %p2114_p8 = por %p78_p7, %p77_p4 }
  0x26   : > { %s59_s6 = ssub.s32 %s1925_s19, %s2613_s13  ;;  %p365_p9 = scmp.ne.s32.totalorder %s1889_s27, %s1885_s26 }
  0x27   : > { %s2560_s9 = scalar_select %p2114_p8, 1, 0 }
  0x28   : > { %s61_s8 = sor.u32 %s60_s21, %s59_s6  ;;  %s352_s22 = sor.u32 %s351_s28, %s59_s6 }
  0x29   : > { %p62_p10 = scmp.eq.s32.totalorder %s61_s8, 0  ;;  %p353_p11 = scmp.eq.s32.totalorder %s352_s22, 0 }
  0x2a   : > { %p366_p12 = scmp.eq.s32.totalorder %s2558_s23, 31  ;;  %p371_p13 = scmp.ne.s32.totalorder %s1885_s26, %s1881_s25 }
  0x2b   : > { %s2128_s24 = scalar_select %p62_p10, %s1901_s30, %s64_s16  }
  0x2c   : > { %s2131_s18 = scalar_select %p353_p11, %s1889_s27, %s355_s17  }
  0x2d   : > { %2561 = sst [smem:[#allocation22_spill]] %s2128_s24  ;;  %p2133_p0 = por %p366_p12, %p365_p9 }
  0x2e   : > { %2562 = sst [smem:[#allocation23_spill]] %s2131_s18  ;;  %s2564_s13 = sadd.s32 4294967294, %s1929_s20  }
  0x2f   : > { %s2563_s7 = scalar_select %p2133_p0, 1, 0 }
  0x30   : > { %p372_p1 = scmp.eq.s32.totalorder %s2564_s13, 31  ;;  %p1602_p2 = scmp.lt.s32.totalorder %s1929_s20, 32 }
  0x31   : > { %s2145_s6 = sand.u32 1, %s1901_s30   ;;  %s1420_s16 = sshll.u32 %s1925_s19, 5 }
  0x32   : > { %p2140_p3 = por %p372_p1, %p371_p13  ;;  %s2534_s8 = sshll.u32 %s2145_s6, 4 }
  0x33   : > { %s2150_s17 = sadd.s32 %s1420_s16, %s2091_s11  ;;  %s429_s28 = scalar_lea.vmem [#allocation3], %s2534_s8 }
  0x34   : > { %s2565_s21 = scalar_select %p2140_p3, 1, 0 }
  0x35   : > { %s439_s22 = sshll.u32 %s429_s28, 4  ;;  %s2535_s13 = sshll.u32 %s2150_s17, 7  ;;  %s2155_s22 = int_to_ptr.vmem [resolvable:$true] %s439_s22 }
  0x36   : > { %2566 = sst [smem:[#allocation24_spill]] %s2565_s21  ;;  %s2567_s0 = sld [smem:[#allocation25_spill]] }
  0x37   : > { %p2166_p4 = pnand %p1602_p2, %p2103_p5 }
  0x39   : > { %p1729_p7 = pneg %p2166_p4 }
  0x3c   : > { %s2162_s30 = scalar_lea.hbm %s2567_s0, %s2535_s13  ;;  %s1732_s23 = scalar_lea.hbm %s2567_s0, 8192 }
  0x3d   : > { %s1727_s28 = scalar_lea.hbm %s2162_s30, 256  ;;  %p1733_p5 = scmp.lt.u32.totalorder %s2162_s30, %s2567_s0 }
  0x3e   : > { %p1728_p6 = scmp.ne.s32.totalorder %s2162_s30, %s1727_s28  ;;  %p1734_p11 = scmp.lt.u32.totalorder %s1732_s23, %s1727_s28 }
  0x3f   : > { %p1736_p13 = scmp.lt.u32.totalorder %s1727_s28, %s2162_s30 }
  0x40   : > { %p1730_p9 = pnand %p1729_p7, %p1728_p6  ;;  %p1735_p12 = por %p1734_p11, %p1733_p5 }
  0x42   : > { %p1731_p10 = pneg %p1730_p9  ;;  %p1737_p1 = por %p1736_p13, %p1735_p12 }
  0x44   : > { %p1738_p2 = pnand %p1737_p1, %p1731_p10 }
  0x46   : > { %1741 = shalt.err (!%p1738_p2)
}
  0x47   : > { %s1742_s16 = scalar_lea.vmem %s2155_s22, 256  ;;  %s1931_s24 = smov [#allocation3]  }
  0x48   : > { %p1743_p6 = scmp.ne.s32.totalorder %s2155_s22, %s1742_s16  ;;  %s1747_s15 = sshll.u32 %s1931_s24, 4  ;;  %s1748_s15 = int_to_ptr.vmem [resolvable:$false] %s1747_s15 }
  0x49   : > { %s1749_s8 = scalar_lea.vmem %s1748_s15, 512  ;;  %p1750_p0 = scmp.lt.s32.totalorder %s2155_s22, %s1748_s15 }
  0x4a   : > { %p1745_p9 = pnand %p1743_p6, %p1729_p7  ;;  %p1751_p5 = scmp.lt.s32.totalorder %s1749_s8, %s1742_s16 }
  0x4c   : > { %p1746_p3 = pneg %p1745_p9  ;;  %p1752_p11 = por %p1751_p5, %p1750_p0 }
  0x4e   : > { %p1753_p12 = pnand %p1752_p11, %p1746_p3 }
  0x50   : > { %1756 = shalt.err (!%p1753_p12)
}
  0x51   : > { %s1932_s13 = smov 2048   ;;  %s1933_s28 = smov 128  }
  0x52   : > { %s1934_s23 = smov 8   ;;  %s2569_s16 = scalar_lea.sflag [#allocation4], %s2145_s6 }
  0x53   : > { %1594 = dma.hbm_to_vmem [thread:$0]  (!%p2166_p4), %s2162_s30, 256, %s2155_s22, %s2569_s16, %s1932_s13, %s1933_s28, %s1934_s23  }
  0x54   : > { %p1426_p0 = scmp.ge.s32.totalorder %s1929_s20, 1  ;;  %p471_p3 = scmp.lt.s32.totalorder %s1929_s20, 33 }
  0x55   : > { %s2571_s15 = sshll.u32 %s2150_s17, 7  ;;  %s2572_s18 = sshll.u32 %s2145_s6, 4 }
  0x56   : > { %p2203_p10 = pnand %p1426_p0, %p471_p3  ;;  %s2212_s19 = scalar_lea.hbm %s2509_s1, %s2571_s15 }
  0x57   : > { %s453_s27 = scalar_lea.vmem [#allocation6], %s2572_s18  ;;  %s450_s30 = scalar_lea.sflag [#allocation7], %s2145_s6 }
  0x58   : > { %s463_s21 = sshll.u32 %s453_s27, 4  ;;  %s1757_s22 = scalar_lea.hbm %s2212_s19, 256  ;;  %s2216_s21 = int_to_ptr.vmem [resolvable:$true] %s463_s21 }
  0x59   : > { %p1758_p13 = scmp.ne.s32.totalorder %s2212_s19, %s1757_s22  ;;  %s1762_s16 = scalar_lea.hbm %s2509_s1, 8192 }
  0x5a   : > { %p1763_p6 = scmp.lt.u32.totalorder %s2212_s19, %s2509_s1  ;;  %p1764_p9 = scmp.lt.u32.totalorder %s1762_s16, %s1757_s22 }
  0x5b   : > { %p1760_p1 = pnand %p1758_p13, %p1729_p7  ;;  %p1766_p11 = scmp.lt.u32.totalorder %s1757_s22, %s2212_s19 }
  0x5c   : > { %p1765_p5 = por %p1764_p9, %p1763_p6 }
  0x5d   : > { %p1761_p2 = pneg %p1760_p1 }
  0x5e   : > { %p1767_p12 = por %p1766_p11, %p1765_p5 }
  0x60   : > { %p1768_p0 = pnand %p1767_p12, %p1761_p2 }
  0x62   : > { %1771 = shalt.err (!%p1768_p0)
}
  0x63   : > { %s1772_s27 = scalar_lea.vmem %s2216_s21, 256  ;;  %s1935_s18 = smov [#allocation6]  }
  0x64   : > { %p1773_p3 = scmp.ne.s32.totalorder %s2216_s21, %s1772_s27  ;;  %s1777_s17 = sshll.u32 %s1935_s18, 4  ;;  %s1778_s17 = int_to_ptr.vmem [resolvable:$false] %s1777_s17 }
  0x65   : > { %s1779_s0 = scalar_lea.vmem %s1778_s17, 512  ;;  %p1780_p8 = scmp.lt.s32.totalorder %s2216_s21, %s1778_s17 }
  0x66   : > { %p1775_p13 = pnand %p1773_p3, %p1729_p7  ;;  %p1781_p6 = scmp.lt.s32.totalorder %s1779_s0, %s1772_s27 }
  0x68   : > { %p1776_p1 = pneg %p1775_p13  ;;  %p1782_p9 = por %p1781_p6, %p1780_p8 }
  0x6a   : > { %p1783_p5 = pnand %p1782_p9, %p1776_p1 }
  0x6c   : > { %1786 = shalt.err (!%p1783_p5)
}
  0x6d   : > { %1597 = dma.hbm_to_vmem [thread:$0]  (!%p2166_p4), %s2212_s19, 256, %s2216_s21, %s450_s30, %s1932_s13, %s1933_s28, %s1934_s23  }
  0x6e   : > { %475 = sbr.rel (%p2203_p10) target bundleno = 912 (0x390), region = 72  ;;  %s477_s22 = sand.u32 (!%p2203_p10), 1, %s1897_s29  }
  0x6f   : > { %s1427_s16 = sshll.u32 (!%p2203_p10), %s477_s22, 4  ;;  %s478_s15 = scalar_lea.sflag (!%p2203_p10), [#allocation4], %s477_s22 }
  0x70   : > { %s481_s8 = scalar_lea.vmem (!%p2203_p10), [#allocation3], %s1427_s16  ;;  %p2573_p8 = scmp.ne.s32.totalorder (!%p2203_p10), %s2560_s9, 0 }
  0x75   : > { %1868 = dma.done.wait (%p2573_p8), %s478_s15, 256  }
  0x76   : > { %1870 = vsyncadd (%p2573_p8), %s478_s15, 4294967040  ;;  %s487_s11 = scalar_lea.sflag [#allocation7], %s477_s22  ;;  %s490_s6 = scalar_lea.vmem [#allocation6], %s1427_s16 }
  0x77   : > { %1872 = dma.done.wait (%p2573_p8), %s487_s11, 256  }
  0x78   : > { %1874 = vsyncadd (%p2573_p8), %s487_s11, 4294967040  ;;  %s535_s19 = sand.u32 1, %s1885_s26   ;;  %p1430_p4 = scmp.ne.s32.totalorder %s1905_s14, 0 }
  0x79   : > { %s1429_s21 = sshll.u32 %s535_s19, 4  ;;  %v1936_v0 = vmov (!%p1430_p4), 0.0  }
  0x7a   : > { %s2261_s13 = scalar_lea.vmem [#allocation8], %s1429_s21  ;;  %545 = sbr.rel (%p1430_p4) target bundleno = 129 (0x81), region = 84 }
  0x7b   : > { %546 = vst [vmem:[%s2261_s13] sm:$0xff] (!%p1430_p4), %v1936_v0  ;;  %547 = vst [vmem:[%s2261_s13 + $0x8] sm:$0xff] (!%p1430_p4), %v1936_v0 }
  0x81 PF: > { %v551_v1 = vld [vmem:[%s481_s8] sm:$0xff]  ;;  %v552_v2 = vld [vmem:[%s481_s8 + $0x8] sm:$0xff]  ;;  %v1937_v3 = vmov 0.0|0.0   ;;  %vm1938_vm0 = vmmov 0   ;;  %v1939_v5 = vmov 0.0   ;;  %v1940_v9 = vmov 0  }
  0x82   : > { %1564 = vmatprep.subr.bf16.mxu0 %v1937_v3  ;;  %v1565_v4 = vpack.c.bf16 %v552_v2, %v551_v1  ;;  %1494 = vmatprep.mubr.msk.f32.mxu0 %vm1938_vm0, %v1939_v5  ;;  %v760_v6 = vld [vmem:[%s490_s6] sm:$0xff]  ;;  %v761_v7 = vld [vmem:[%s490_s6 + $0x8] sm:$0xff]  ;;  %vm571_vm1 = vcmask 130048   ;;  %s2574_s11 = sld [smem:[#allocation27_spill]]  ;;  %s2575_s28 = sld [smem:[#allocation28_spill]]  ;;  %vm670_vm2 = vcmask 195584  }
  0x83   : > { %v1570_v8 = vpack.c.bf16 %v761_v7, %v760_v6  ;;  %1719 = vset.pattern.permute.xlu0 %v1940_v9  ;;  %1720 = vset.pattern.permute.xlu1 %v1940_v9  ;;  %v548_v10 = vld [vmem:[%s2510_s2] sm:$0xff]  ;;  %v555_v12 = vld [vmem:[%s2511_s3 + $0x10] sm:$0xff]  ;;  %v554_v13 = vld [vmem:[%s2511_s3 + $0x8] sm:$0xff]  ;;  %s2577_s22 = sld [smem:[#allocation26_spill]]  ;;  %s2578_s21 = sld [smem:[#allocation29_spill]] }
  0x84   : > { %1566 = vmatpush3.bf16.msra.mxu0 %v1565_v4  ;;  %1567 = vmatprep.subr.bf16.mxu1 %v1937_v3  ;;  %v553_v11 = vld [vmem:[%s2511_s3] sm:$0xff]  ;;  %v549_v14 = vld [vmem:[%s2510_s2 + $0x8] sm:$0xff]  ;;  %v771_v15 = vld [vmem:[%s2513_s5 + $0x18] sm:$0xff]  ;;  %s2579_s18 = sld [smem:[#allocation30_spill]]  ;;  %s2581_s15 = sld [smem:[#allocation15_spill]] }
  0x85   : > { %1571 = vmatprep.subr.bf16.mxu0 %v1570_v8  ;;  %1509 = vmatprep.mubr.msk.f32.mxu1 %vm1938_vm0, %v1939_v5  ;;  %v772_v16 = vld [vmem:[%s2513_s5 + $0x20] sm:$0xff]  ;;  %v550_v17 = vld [vmem:[%s2510_s2 + $0x10] sm:$0xff]  ;;  %v773_v18 = vld [vmem:[%s2513_s5 + $0x28] sm:$0xff]  ;;  %s2582_s8 = sld [smem:[#allocation14_spill]]  ;;  %s2583_s27 = sld [smem:[#allocation31_spill]] }
  0x86   : > { %558 = vperm.xlu0 %1719, %v553_v11   ;;  %568 = vperm.xlu1 %1720, %v555_v12   ;;  %v762_v19 = vld [vmem:[%s2512_s4] sm:$0xff]  ;;  %v763_v21 = vld [vmem:[%s2512_s4 + $0x8] sm:$0xff]  ;;  %v764_v23 = vld [vmem:[%s2512_s4 + $0x10] sm:$0xff]  ;;  %s2435_s17 = scalar_lea.sflag [#allocation5], %s535_s19  ;;  %p2585_p10 = scmp.ne.s32.totalorder %s2563_s7, 0 }
  0x87   : > { %1495 = vmatmul.mubr.msk.f32.vlgmr.msra.gmra.mrb[0].mxu0 %vm571_vm1, %v548_v10  ;;  %v768_v20 = vld [vmem:[%s2513_s5] sm:$0xff]  ;;  %v769_v22 = vld [vmem:[%s2513_s5 + $0x8] sm:$0xff]  ;;  %v770_v24 = vld [vmem:[%s2513_s5 + $0x10] sm:$0xff] }
  0x88   : > { %1497 = vmatprep.mubr.msk.f32.mxu0 %vm1938_vm0, %v1939_v5  ;;  %1573 = vmatpush3.bf16.msra.mxu0 %v1570_v8  ;;  %v765_v25 = vld [vmem:[%s2512_s4 + $0x18] sm:$0xff]  ;;  %v1119_v26 = vld [vmem:[%s2518_s10] sm:$0xff]  ;;  %v1120_v28 = vld [vmem:[%s2518_s10 + $0x8] sm:$0xff]  ;;  %s2576_s23 = smov %s2575_s28 }
  0x89   : > { %v766_v27 = vld [vmem:[%s2512_s4 + $0x20] sm:$0xff]  ;;  %v767_v29 = vld [vmem:[%s2512_s4 + $0x28] sm:$0xff]  ;;  %v1121_v30 = vld [vmem:[%s2518_s10 + $0x10] sm:$0xff] }
  0x8a   : > { %563 = vperm.xlu0 %1719, %v554_v13   ;;  %791 = vperm.xlu1 %1720, %v771_v15   ;;  %v1148_v31 = vld [vmem:[%s2520_s12] sm:$0xff]  ;;  %v1149_v32 = vld [vmem:[%s2520_s12 + $0x8] sm:$0xff]  ;;  %s2580_s0 = smov %s2579_s18  ;;  %s1451_s6 = sshll.u32 %s2581_s15, 2 }
  0x8b   : > { %1498 = vmatmul.mubr.msk.f32.gmra.mrb[2].mxu0 %vm571_vm1, %v549_v14  ;;  %v931_v33 = vld [vmem:[%s2574_s11] sm:$0xff]  ;;  %v932_v34 = vld [vmem:[%s2574_s11 + $0x8] sm:$0xff]  ;;  %s1284_s14 = sadd.s32 %s2582_s8, %s1451_s6  ;;  %s2584_s8 = smov %s2583_s27 }
  0x8c   : > { %1500 = vmatprep.mubr.msk.f32.mxu0 %vm1938_vm0, %v1939_v5  ;;  %v667_v0 = vld [vmem:[%s2575_s28] sm:$0xff]  ;;  %v668_v9 = vld [vmem:[%s2576_s23 + $0x8] sm:$0xff]  ;;  %s1452_s9 = sshll.u32 %s1284_s14, 7  ;;  %s1287_s28 = sshll.u32 %s2261_s13, 4  ;;  %s2429_s28 = int_to_ptr.vmem [resolvable:$true] %s1287_s28 }
  0x8d   : > { %s1787_s16 = scalar_lea.vmem %s2429_s28, 256  ;;  %s1941_s15 = smov [#allocation8]  }
  0x8e   : > { %796 = vperm.xlu0 %1719, %v772_v16   ;;  %801 = vperm.xlu1 %1720, %v773_v18   ;;  %v669_v16 = vld [vmem:[%s2576_s23 + $0x10] sm:$0xff]  ;;  %v929_v18 = vld [vmem:[%s2577_s22] sm:$0xff]  ;;  %p1788_p7 = scmp.ne.s32.totalorder %s2429_s28, %s1787_s16  ;;  %s1791_s6 = sshll.u32 %s1941_s15, 4  ;;  %s1792_s6 = int_to_ptr.vmem [resolvable:$false] %s1791_s6 }
  0x8f   : > { %1501 = vmatmul.mubr.msk.f32.gmra.mrb[4].mxu0 %vm571_vm1, %v550_v17  ;;  %s1793_s14 = scalar_lea.vmem %s1792_s6, 512  ;;  %p1794_p12 = scmp.lt.s32.totalorder %s2429_s28, %s1792_s6 }
  0x90   : > { %1522 = vmatprep.mubr.msk.f32.mxu0 %vm571_vm1, %v762_v19  ;;  %p1789_p2 = pnand %p1788_p7, %p2585_p10  ;;  %p1795_p0 = scmp.lt.s32.totalorder %s1793_s14, %s1787_s16 }
  0x92   : > { %776 = vperm.xlu0 %1719, %v768_v20   ;;  %781 = vperm.xlu1 %1720, %v769_v22   ;;  %p1790_p11 = pneg %p1789_p2  ;;  %p1796_p3 = por %p1795_p0, %p1794_p12 }
  0x93   : > { %1523 = vmatmul.mubr.msk.f32.vlgmr.msra.gmra.mrb[6].mxu0 %vm571_vm1, %v763_v21 }
  0x94   : > { %1525 = vmatprep.mubr.msk.f32.mxu0 %vm571_vm1, %v764_v23  ;;  %p1797_p13 = pnand %p1796_p3, %p1790_p11 }
  0x96   : > { %786 = vperm.xlu0 %1719, %v770_v24   ;;  %1124 = vperm.xlu1 %1720, %v1119_v26   ;;  %v930_v26 = vld [vmem:[%s2577_s22 + $0x8] sm:$0xff] }
  0x97   : > { %1526 = vmatmul.mubr.msk.f32.gmra.mrb[8].mxu0 %vm571_vm1, %v765_v25 }
  0x98   : > { %1528 = vmatprep.mubr.msk.f32.mxu0 %vm571_vm1, %v766_v27 }
  0x9a   : > { %1129 = vperm.xlu0 %1719, %v1120_v28   ;;  %1134 = vperm.xlu1 %1720, %v1121_v30   ;;  %v1026_v30 = vld [vmem:[%s2578_s21 + $0x10] sm:$0xff] }
  0x9b   : > { %1529 = vmatmul.mubr.msk.f32.gmra.mrb[10].mxu0 %vm571_vm1, %v767_v29  ;;  %v1024_v29 = vld [vmem:[%s2578_s21] sm:$0xff] }
  0x9e   : > { %1152 = vperm.xlu0 %1719, %v1148_v31   ;;  %1157 = vperm.xlu1 %1720, %v1149_v32   ;;  %v1140_v31 = vld [vmem:[%s2579_s18] sm:$0xff]  ;;  %s2427_s18 = scalar_lea.hbm %s2583_s27, %s1452_s9 }
  0x9f   : > { %1561 = vmatprep.mubr.msk.f32.mxu0 %vm670_vm2, %v1140_v31 }
  0xa2   : > { %935 = vperm.xlu0 %1719, %v931_v33   ;;  %940 = vperm.xlu1 %1720, %v932_v34  }
 0x105   : > { %v569_v35 = vpop.permute.xlu1 %568  ;;  %v559_v36 = vpop.permute.xlu0 %558 }
 0x109   : > { %v792_v37 = vpop.permute.xlu1 %791  ;;  %v564_v39 = vpop.permute.xlu0 %563 }
 0x10d   : > { %v802_v46 = vpop.permute.xlu1 %801  ;;  %v797_v47 = vpop.permute.xlu0 %796 }
 0x111   : > { %v782_v56 = vpop.permute.xlu1 %781  ;;  %v777_v58 = vpop.permute.xlu0 %776 }
 0x115   : > { %v787_v23 = vpop.permute.xlu0 %786 }
 0x15a   : > { %v647_v38 = vpop.f32.mrb[0].mxu0 }
 0x15b   : > { %v648_v40 = vadd.f32 %v647_v38, %v559_v36  ;;  %v1496_v41 = vpop.f32.mrb[1].mxu0 }
 0x15d   : > { %v661_v43 = vmul.f32 0.2, %v648_v40 }
 0x15e   : > { %v652_v42 = vpop.f32.mrb[2].mxu0 }
 0x15f   : > { %v653_v44 = vadd.f32 %v652_v42, %v564_v39  ;;  %v1499_v45 = vpop.f32.mrb[3].mxu0  ;;  %v664_v50 = vmax.f32 %v648_v40, %v661_v43  ;;  %v1125_v42 = vpop.permute.xlu1 %1124 }
 0x161   : > { %v662_v48 = vmul.f32 0.2, %v653_v44 }
 0x162   : > { %v657_v49 = vpop.f32.mrb[4].mxu0 }
 0x163   : > { %v665_v51 = vmax.f32 %v653_v44, %v662_v48  ;;  %v658_v52 = vadd.f32 %v657_v49, %v569_v35  ;;  %v1502_v53 = vpop.f32.mrb[5].mxu0 }
 0x165   : > { %v663_v54 = vmul.f32 0.2, %v658_v52  ;;  %v1568_v55 = vpack.c.bf16 %v665_v51, %v664_v50 }
 0x166   : > { %v1524_v57 = vpop.f32.mrb[6].mxu0 }
 0x167   : > { %v894_v59 = vadd.f32 %v1524_v57, %v782_v56  ;;  %1569 = vmatpush3.bf16.msra.mxu1 %v1568_v55  ;;  %v888_v60 = vpop.f32.mrb[7].mxu0  ;;  %v666_v62 = vmax.f32 %v658_v52, %v663_v54  ;;  %v1135_v54 = vpop.permute.xlu1 %1134 }
 0x168   : > { %v889_v61 = vadd.f32 %v888_v60, %v777_v58  ;;  %1507 = vmatprep.subr.mxu1 %v1939_v5 }
 0x169   : > { %v918_v63 = vmul.f32 0.2, %v894_v59 }
 0x16a   : > { %v917_v1 = vmul.f32 0.2, %v889_v61  ;;  %v1527_v2 = vpop.f32.mrb[8].mxu0 }
 0x16b   : > { %v924_v4 = vmax.f32 %v894_v59, %v918_v63  ;;  %1508 = vmatpush3.msra.mxu1 %v666_v62  ;;  %v898_v6 = vpop.f32.mrb[9].mxu0  ;;  %v904_v8 = vadd.f32 %v1527_v2, %v792_v37  ;;  %v1158_v62 = vpop.permute.xlu1 %1157 }
 0x16c   : > { %v923_v7 = vmax.f32 %v889_v61, %v917_v1  ;;  %1510 = vmatmul.mubr.msk.f32.vlgmr.msra.gmra.mrb[0].mxu1 %vm670_vm2, %v667_v0  ;;  %v899_v25 = vadd.f32 %v898_v6, %v787_v23  ;;  %v1141_v61 = vld [vmem:[%s2580_s0 + $0x8] sm:$0xff] }
 0x16d   : > { %1512 = vmatprep.mubr.msk.f32.mxu1 %vm1938_vm0, %v1939_v5  ;;  %v920_v13 = vmul.f32 0.2, %v904_v8 }
 0x16e   : > { %v1579_v10 = vpack.c.bf16 %v924_v4, %v923_v7  ;;  %v1530_v11 = vpop.f32.mrb[10].mxu0  ;;  %v919_v27 = vmul.f32 0.2, %v899_v25 }
 0x16f   : > { %v908_v12 = vpop.f32.mrb[11].mxu0  ;;  %v914_v14 = vadd.f32 %v1530_v11, %v802_v46  ;;  %v926_v19 = vmax.f32 %v904_v8, %v920_v13 }
 0x170   : > { %v909_v15 = vadd.f32 %v908_v12, %v797_v47  ;;  %1513 = vmatmul.mubr.msk.f32.gmra.mrb[2].mxu1 %vm670_vm2, %v668_v9  ;;  %v925_v28 = vmax.f32 %v899_v25, %v919_v27  ;;  %v1130_v47 = vpop.permute.xlu0 %1129 }
 0x171   : > { %1515 = vmatprep.mubr.msk.f32.mxu1 %vm1938_vm0, %v1939_v5  ;;  %v922_v20 = vmul.f32 0.2, %v914_v14 }
 0x172   : > { %v921_v17 = vmul.f32 0.2, %v909_v15 }
 0x173   : > { %v928_v24 = vmax.f32 %v914_v14, %v922_v20 }
 0x174   : > { %v927_v21 = vmax.f32 %v909_v15, %v921_v17  ;;  %1516 = vmatmul.mubr.msk.f32.gmra.mrb[4].mxu1 %vm670_vm2, %v669_v16  ;;  %v1153_v0 = vpop.permute.xlu0 %1152 }
 0x175   : > { %1537 = vmatprep.mubr.msk.f32.mxu1 %vm670_vm2, %v929_v18 }
 0x176   : > { %v1574_v22 = vpack.c.bf16 %v927_v21, %v926_v19 }
 0x178   : > { %1575 = vmatprep.subr.bf16.mxu1 %v1574_v22  ;;  %v936_v27 = vpop.permute.xlu0 %935 }
 0x179   : > { %1577 = vmatpush3.bf16.msra.mxu1 %v1574_v22 }
 0x17a   : > { %1535 = vmatprep.subr.mxu1 %v928_v24 }
 0x17d   : > { %1536 = vmatpush3.msra.mxu1 %v928_v24 }
 0x17e   : > { %1538 = vmatmul.mubr.msk.f32.vlgmr.msra.gmra.mrb[6].mxu1 %vm670_vm2, %v930_v26  ;;  %1578 = vmatprep.subr.bf16.mxu1 %v1937_v3  ;;  %v1025_v3 = vld [vmem:[%s2578_s21 + $0x8] sm:$0xff] }
 0x17f   : > { %1580 = vmatpush3.bf16.msra.mxu1 %v1579_v10  ;;  %1546 = vmatprep.mubr.msk.f32.mxu1 %vm1938_vm0, %v1939_v5 }
 0x180   : > { %1544 = vmatprep.subr.mxu1 %v1939_v5 }
 0x183   : > { %1545 = vmatpush3.msra.mxu1 %v925_v28  ;;  %v941_v28 = vpop.permute.xlu1 %940 }
 0x184   : > { %1547 = vmatmul.mubr.msk.f32.vlgmr.msra.gmra.mrb[8].mxu1 %vm670_vm2, %v1024_v29 }
 0x185   : > { %1549 = vmatprep.mubr.msk.f32.mxu1 %vm1938_vm0, %v1939_v5 }
 0x188   : > { %1550 = vmatmul.mubr.msk.f32.gmra.mrb[10].mxu1 %vm670_vm2, %v1025_v3 }
 0x189   : > { %1552 = vmatprep.mubr.msk.f32.mxu1 %vm1938_vm0, %v1939_v5 }
 0x18c   : > { %1553 = vmatmul.mubr.msk.f32.gmra.mrb[12].mxu1 %vm670_vm2, %v1026_v30 }
 0x23f   : > { %v746_v32 = vpop.f32.mrb[0].mxu1 }
 0x240   : > { %v1511_v33 = vpop.f32.mrb[1].mxu1 }
 0x241   : > { %v1265_v33 = vld [vmem:[%s2261_s13 + $0x8] sm:$0xff] }
 0x243   : > { %v751_v34 = vpop.f32.mrb[2].mxu1 }
 0x244   : > { %v1514_v35 = vpop.f32.mrb[3].mxu1 }
 0x247   : > { %v756_v36 = vpop.f32.mrb[4].mxu1 }
 0x248   : > { %v1517_v37 = vpop.f32.mrb[5].mxu1 }
 0x251   : > { %v2409_v38 = vpop.f32.mrb[6].mxu1 }
 0x252   : > { %v2411_v5 = vpop.f32.mrb[7].mxu1  ;;  %v1021_v29 = vadd.f32 %v2409_v38, %v941_v28 }
 0x253   : > { %v1016_v3 = vadd.f32 %v2411_v5, %v936_v27 }
 0x257   : > { %v1102_v39 = vpop.f32.mrb[8].mxu1 }
 0x258   : > { %v1116_v40 = vsub.f32 %v746_v32, %v1102_v39  ;;  %v1548_v41 = vpop.f32.mrb[9].mxu1  ;;  %v1264_v32 = vld [vmem:[%s2261_s13] sm:$0xff] }
 0x25a   : > { %v1137_v43 = vadd.f32 %v1125_v42, %v1116_v40 }
 0x25b   : > { %v1107_v44 = vpop.f32.mrb[10].mxu1 }
 0x25c   : > { %v1117_v45 = vsub.f32 %v751_v34, %v1107_v44  ;;  %v1551_v46 = vpop.f32.mrb[11].mxu1  ;;  %v1142_v48 = vmul.f32 0.2, %v1137_v43 }
 0x25e   : > { %v1138_v49 = vadd.f32 %v1130_v47, %v1117_v45  ;;  %v1145_v55 = vmax.f32 %v1137_v43, %v1142_v48 }
 0x25f   : > { %v1112_v50 = vpop.f32.mrb[12].mxu1 }
 0x260   : > { %v1143_v51 = vmul.f32 0.2, %v1138_v49  ;;  %v1118_v52 = vsub.f32 %v756_v36, %v1112_v50  ;;  %v1554_v53 = vpop.f32.mrb[13].mxu1 }
 0x262   : > { %v1146_v56 = vmax.f32 %v1138_v49, %v1143_v51  ;;  %v1139_v57 = vadd.f32 %v1135_v54, %v1118_v52 }
 0x264   : > { %v1144_v58 = vmul.f32 0.2, %v1139_v57  ;;  %v1581_v59 = vpack.c.bf16 %v1146_v56, %v1145_v55 }
 0x266   : > { %1582 = vmatprep.subr.bf16.mxu0 %v1581_v59  ;;  %v1147_v60 = vmax.f32 %v1139_v57, %v1144_v58 }
 0x267   : > { %1584 = vmatpush3.bf16.msra.mxu0 %v1581_v59 }
 0x268   : > { %1559 = vmatprep.subr.mxu0 %v1147_v60 }
 0x26b   : > { %1560 = vmatpush3.msra.mxu0 %v1147_v60 }
 0x26c   : > { %1562 = vmatmul.mubr.msk.f32.vlgmr.msra.gmra.mrb[12].mxu0 %vm670_vm2, %v1141_v61 }
 0x33f   : > { %v1563_v63 = vpop.f32.mrb[12].mxu0 }
 0x340   : > { %v1238_v1 = vadd.f32 %v1563_v63, %v1158_v62  ;;  %v1232_v2 = vpop.f32.mrb[13].mxu0 }
 0x341   : > { %v1233_v4 = vadd.f32 %v1232_v2, %v1153_v0 }
 0x343   : > { %v1241_v6 = vmax.f32 %v1233_v4, %v1238_v1 }
 0x345   : > { %v1242_v7 = vrot.slane %v1241_v6, 4 }
 0x347   : > { %v1243_v8 = vmax.f32 %v1241_v6, %v1242_v7 }
 0x349   : > { %v1244_v9 = vrot.slane %v1243_v8, 2 }
 0x34b   : > { %v1245_v10 = vmax.f32 %v1243_v8, %v1244_v9 }
 0x34d   : > { %v1246_v11 = vrot.slane %v1245_v10, 1 }
 0x34f   : > { %v1247_v12 = vmax.f32 %v1245_v10, %v1246_v11 }
 0x351   : > { %v1248_v13 = vsub.f32 %v1233_v4, %v1247_v12  ;;  %v1249_v14 = vsub.f32 %v1238_v1, %v1247_v12 }
 0x353   : > { %v1250_v15 = vmul.f32 1.442695, %v1248_v13  ;;  %v1252_v16 = vmul.f32 1.442695, %v1249_v14 }
 0x355   : > { %1721 = vpow2.f32 %v1250_v15 }
 0x356   : > { %1723 = vpow2.f32 %v1252_v16 }
 0x35f   : > { %v1722_v17 = vpop.eup %1721 }
 0x360   : > { %v1724_v18 = vpop.eup %1723 }
 0x361   : > { %v1254_v19 = vadd.f32 %v1724_v18, %v1722_v17 }
 0x363   : > { %v1255_v20 = vrot.slane %v1254_v19, 4 }
 0x365   : > { %v1256_v21 = vadd.f32 %v1255_v20, %v1254_v19 }
 0x367   : > { %v1257_v22 = vrot.slane %v1256_v21, 2 }
 0x369   : > { %v1258_v23 = vadd.f32 %v1257_v22, %v1256_v21 }
 0x36b   : > { %v1259_v24 = vrot.slane %v1258_v23, 1 }
 0x36d   : > { %v1260_v25 = vadd.f32 %v1259_v24, %v1258_v23 }
 0x36f   : > { %1725 = vrcp.f32 %v1260_v25 }
 0x379   : > { %v1726_v26 = vpop.eup %1725 }
 0x37a   : > { %v1262_v30 = vmul.f32 %v1726_v26, %v1722_v17  ;;  %v1263_v31 = vmul.f32 %v1726_v26, %v1724_v18 }
 0x37c   : > { %v1266_v34 = vmul.f32 %v1262_v30, %v1016_v3  ;;  %v1267_v35 = vmul.f32 %v1263_v31, %v1021_v29 }
 0x37e   : > { %v1268_v36 = vadd.f32 %v1266_v34, %v1264_v32  ;;  %v1269_v37 = vadd.f32 %v1267_v35, %v1265_v33 }
 0x380   : > { %1270 = vst [vmem:[%s2261_s13] sm:$0xff] %v1268_v36  ;;  %1271 = vst [vmem:[%s2261_s13 + $0x8] sm:$0xff] %v1269_v37 }
 0x381   : > { %1800 = shalt.err (!%p1797_p13)
}
 0x382   : > { %s1801_s19 = scalar_lea.hbm %s2427_s18, 256  ;;  %s1805_s24 = scalar_lea.hbm %s2584_s8, 1024 }
 0x383   : > { %p1802_p1 = scmp.ne.s32.totalorder %s2427_s18, %s1801_s19  ;;  %p1806_p5 = scmp.lt.u32.totalorder %s2427_s18, %s2584_s8 }
 0x384   : > { %p1807_p8 = scmp.lt.u32.totalorder %s1805_s24, %s1801_s19  ;;  %p1809_p7 = scmp.lt.u32.totalorder %s1801_s19, %s2427_s18 }
 0x385   : > { %p1803_p6 = pnand %p1802_p1, %p2585_p10 }
 0x386   : > { %p1808_p4 = por %p1807_p8, %p1806_p5 }
 0x387   : > { %p1804_p9 = pneg %p1803_p6 }
 0x388   : > { %p1810_p2 = por %p1809_p7, %p1808_p4 }
 0x38a   : > { %p1811_p11 = pnand %p1810_p2, %p1804_p9 }
 0x38c   : > { %1814 = shalt.err (!%p1811_p11)
}
 0x38d   : > { %s1942_s16 = smov 128   ;;  %s1943_s15 = smov 256  }
 0x38e   : > { %s1944_s6 = smov 8  }
 0x38f   : > { %1589 = dma.vmem_to_hbm [thread:$0]  (%p2585_p10), %s2429_s28, 256, %s2427_s18, %s2435_s17, %s1942_s16, %s1943_s15, %s1944_s6  }
 0x390 PF: > { %s2586_s14 = sld [smem:[#allocation24_spill]]  ;;  %p1603_p12 = scmp.ge.s32.totalorder %s1929_s20, 2 }
 0x391   : > { %s1302_s13 = sand.u32 1, %s1881_s25  }
 0x392   : > { %s1303_s19 = scalar_lea.sflag [#allocation5], %s1302_s13 }
 0x396   : > { %p2587_p0 = scmp.ne.s32.totalorder %s2586_s14, 0 }
 0x398   : > { %p1599_p3 = pnand %p1603_p12, %p2587_p0 }
 0x39a   : > { %1876 = dma.done.wait (!%p1599_p3), %s1303_s19, 256  }
 0x39b   : > { %1878 = vsyncadd (!%p1599_p3), %s1303_s19, 4294967040  ;;  %s32_s20 = sadd.s32 1, %s1929_s20   ;;  %s2589_s7 = sld [smem:[#allocation12_spill]] }
 0x39c   : > { %p2464_p13 = scmp.ge.s32.totalorder %s32_s20, 34   ;;  %s2590_s27 = sld [smem:[#allocation23_spill]] }
 0x39d   : > { %s2591_s18 = sld [smem:[#allocation13_spill]]  ;;  %s2592_s30 = sld [smem:[#allocation22_spill]] }
 0x39e   : > { %s2593_s14 = sld [smem:[#allocation16_spill]]  ;;  %s2594_s15 = sld [smem:[#allocation17_spill]] }
 0x39f   : > { %s2595_s16 = sld [smem:[#allocation18_spill]]  ;;  %s2596_s17 = sld [smem:[#allocation19_spill]] }
 0x3a0   : > { %s2597_s24 = sld [smem:[#allocation20_spill]]  ;;  %s2598_s19 = sld [smem:[#allocation21_spill]] }
 0x3a1   : > { %s2599_s25 = smov %s1885_s26  ;;  %s2600_s26 = smov %s2589_s7 }
 0x3a2   : > { %s2601_s28 = smov %s1897_s29  ;;  %31 = sbr.rel (!%p2464_p13) target bundleno = 20 (0x14), region = 134 }
 0x3a3   : > { %s2602_s29 = smov %s2591_s18 }
 0x3a6   : > { %s2603_s18 = smov %s2597_s24 }
 0x3a9   :  { %1308 = vsyncpa [#allocation4], 1 }
 0x3aa   :  { %1310 = vsyncpa [#allocation4 + $0x1], 1 }
 0x3ab   :  { %1311 = vsyncpa [#allocation7], 1 }
 0x3ac   :  { %1313 = vsyncpa [#allocation7 + $0x1], 1 }
 0x3ad   :  { %1314 = vsyncpa [#allocation5], 1 }
 0x3ae   :  { %1316 = vsyncpa [#allocation5 + $0x1], 1 }

</bundles_post_ra>
